<compile_context>
chip_gen: v7x
topology: tpu7x:2x2x1
jax: 0.10.0
libtpu: 0.0.40
codegen_flags: <defaults>
</compile_context>

<pallas_src>
import math
import functools

import jax
import jax.numpy as jnp
from jax.experimental import pallas as pl
from jax.experimental.pallas import tpu as pltpu

SELU_ALPHA = 1.6732632423543772
SELU_SCALE = 1.0507009873554805
LOG_2PI = math.log(2.0 * math.pi)
OUT_W = 128          # lane-dense packed output width


def _round_up(x, m):
    return ((x + m - 1) // m) * m


def _cdiv(a, b):
    return -(-a // b)


def _selu(x):
    return SELU_SCALE * jnp.where(x > 0, x, SELU_ALPHA * (jnp.exp(x) - 1.0))


# -----------------------------------------------------------------------------
# Fused kernel:
#   obs tile -> packed MLP (final layer directly emits the lane-dense slab
#   [mean | value | zero pad]) -> MVN log_prob -> two stores:
#   (TM, OUT_W) bf16 slab and (TM, 2) f32 [log_prob, value].
# All math stays f32 (f32 accumulation); only the slab store is bf16.
# -----------------------------------------------------------------------------
def _fused_kernel(num_layers, act_dim, obs_ref, act_ref, dist_ref, *refs):
    out_slab_ref = refs[-2]     # (TM, OUT_W) bf16: [mean | value | 0 ...]
    out_lpv_ref = refs[-1]      # (TM, 2)     f32 : [log_prob, value]
    layer_refs = refs[:-2]

    h = obs_ref[...]                                        # (TM, obs) bf16
    for l in range(num_layers):
        w = layer_refs[2 * l][...]          # (in, out); bf16 hidden, f32 last
        b = layer_refs[2 * l + 1][...]      # (1, out) f32
        h = jnp.dot(h.astype(w.dtype), w,
                    preferred_element_type=jnp.float32) + b
        if l < num_layers - 1:
            h = _selu(h)
    # Final packed layer is zero-padded to OUT_W columns at pack time, so `h`
    # already IS the lane-dense output slab: [mean(A) | value | zeros].
    mean = h[:, :act_dim]                                   # (TM, A) f32
    value = h[:, act_dim:act_dim + 1]                       # (TM, 1) f32

    # Distribution constants hoisted to the wrapper (no per-tile exp / reduce):
    #   inv_scale = exp(-2*log_std)  (diag(L) = exp(2*log_std) per the module)
    #   neg_const = -(sum(2*log_std) + 0.5*A*log(2*pi))
    inv_scale = dist_ref[:, :act_dim]                       # (1, A)
    neg_const = dist_ref[:, act_dim:act_dim + 1]            # (1, 1)
    z = (act_ref[...] - mean) * inv_scale
    log_prob = -0.5 * jnp.sum(z * z, axis=-1, keepdims=True) + neg_const

    out_slab_ref[...] = h.astype(jnp.bfloat16)              # one lane-dense store
    out_lpv_ref[...] = jnp.concatenate([log_prob, value], axis=-1)


# -----------------------------------------------------------------------------
# Batch-tile selection: respect tm_max, avoid ~2x padding waste on awkward
# batch sizes, and keep >=4 (even) grid steps when the batch allows so v7x's
# two TensorCores each get >=2 pipelined steps.
# -----------------------------------------------------------------------------
def _choose_tile(batch, tm_max):
    n_steps = max(_cdiv(batch, tm_max), min(4, _cdiv(batch, 8)))
    if n_steps > 1 and n_steps % 2:
        n_steps += 1
    tm = _round_up(_cdiv(batch, n_steps), 8)
    return tm, n_steps


# -----------------------------------------------------------------------------
# Wrapper: one pallas_call, batch-tiled grid, weights / dist constants resident.
# -----------------------------------------------------------------------------
def fused_actor_critic_call(observations, actions, dist_row, packed_params,
                            act_dim, tm_max=2048):
    batch, obs_dim = observations.shape
    tm, n_steps = _choose_tile(batch, tm_max)
    padded_batch = tm * n_steps

    obs = observations.astype(jnp.bfloat16)  # halves input DMA; matmul is bf16 anyway
    acts = actions                           # keep f32: feeds log_prob directly
    if padded_batch != batch:
        pad = padded_batch - batch
        obs = jnp.pad(obs, ((0, pad), (0, 0)))
        acts = jnp.pad(acts, ((0, pad), (0, 0)))

    num_layers = len(packed_params)
    flat = []
    for w, b in packed_params:
        flat += [w, b]

    row_tile = lambda i: (i, 0)    # tiles that move with the batch grid
    resident = lambda i: (0, 0)    # constant block -> stays VMEM-resident
    # TODO(synk): resident specs could use pipeline_mode=pl.Buffered(1); at these
    # weight sizes double-buffering them costs essentially no VMEM, so skipped.

    in_specs = [pl.BlockSpec((tm, obs_dim), row_tile),
                pl.BlockSpec((tm, act_dim), row_tile),
                pl.BlockSpec(dist_row.shape, resident)]
    for w, b in packed_params:
        in_specs += [pl.BlockSpec(w.shape, resident),
                     pl.BlockSpec(b.shape, resident)]

    kernel = functools.partial(_fused_kernel, num_layers, act_dim)
    out_slab, out_lpv = pl.pallas_call(
        kernel,
        out_shape=(jax.ShapeDtypeStruct((padded_batch, OUT_W), jnp.bfloat16),
                   jax.ShapeDtypeStruct((padded_batch, 2), jnp.float32)),
        grid=(n_steps,),
        in_specs=in_specs,
        out_specs=(pl.BlockSpec((tm, OUT_W), row_tile),
                   pl.BlockSpec((tm, 2), row_tile)),
        compiler_params=pltpu.CompilerParams(
            dimension_semantics=("parallel",)),   # shard batch over v7x's 2 TCs
    )(obs, acts, dist_row, *flat)

    log_prob = out_lpv[:batch, 0]
    value = out_lpv[:batch, 1:2]
    mean = out_slab[:batch, :act_dim].astype(jnp.float32)
    return log_prob, value, mean


def actor_critic_forward(packed_params, log_std_row, observations, states, actions):
    del states  # unused by the reference forward()
    batch = observations.shape[0]
    act_dim = log_std_row.shape[-1]

    # Hoisted distribution constants (the module passes scale_tril = diag(std*std),
    # i.e. diag(L) = exp(2*log_std)).
    inv_scale = jnp.exp(-2.0 * log_std_row)                                   # (1, A)
    neg_const = -(jnp.sum(2.0 * log_std_row) + 0.5 * act_dim * LOG_2PI)       # scalar
    dist_row = jnp.concatenate([inv_scale, jnp.reshape(neg_const, (1, 1))],
                               axis=-1)                                       # (1, A+1)

    log_prob, value, mean = fused_actor_critic_call(
        observations, actions, dist_row, packed_params, act_dim)

    # Entropy of this MVN is batch-independent -> plain JAX, no kernel output.
    entropy_scalar = (0.5 * act_dim * (1.0 + LOG_2PI) + jnp.sum(2.0 * log_std_row))
    entropy = jnp.broadcast_to(entropy_scalar, (batch,))
    log_std_rep = jnp.broadcast_to(log_std_row, (batch, act_dim))
    return log_prob, entropy, value, mean, log_std_rep


# -----------------------------------------------------------------------------
# Deterministic parameter construction (orthogonal init, like the module),
# weights pre-transposed to [in, out] and packed (actor|critic) for the kernel.
# -----------------------------------------------------------------------------
def orthogonal_init(key, out_dim, in_dim, gain):
    n, m = max(out_dim, in_dim), min(out_dim, in_dim)
    a = jax.random.normal(key, (n, m), dtype=jnp.float32)
    q, r = jnp.linalg.qr(a)
    q = q * jnp.sign(jnp.diag(r))[None, :]
    if out_dim < in_dim:
        q = q.T
    return (gain * q[:out_dim, :in_dim]).astype(jnp.float32)


def build_mlp_params(key, dims, gains):
    """dims: [in, h1, ..., out]; returns [(W:[in,out] f32, b:[1,out] f32)]."""
    params = []
    for i, gain in enumerate(gains):
        key, kw, kb = jax.random.split(key, 3)
        in_dim, out_dim = dims[i], dims[i + 1]
        w = orthogonal_init(kw, out_dim, in_dim, gain).T        # -> (in, out)
        bound = 1.0 / math.sqrt(in_dim)
        b = jax.random.uniform(kb, (1, out_dim), jnp.float32, -bound, bound)
        params.append((w, b))
    return params, key


def pack_actor_critic_params(actor_params, critic_params, out_w=OUT_W):
    """Layer 0: concat along out-dim (both consume observations).
    Middle layers: block-diagonal.  Last layer: columns laid out as
    [actor mean | critic value | zero pad to out_w], so the final matmul already
    produces the lane-dense output slab.  Hidden weights cast to bf16 (MXU native);
    the final layer (gain-0.01 actor head) stays f32 — it is tiny and resident."""
    # TODO(synk): support unequal actor/critic depths by running two stacks in the kernel.
    assert len(actor_params) == len(critic_params), "packing requires equal depth"
    n = len(actor_params)
    packed = []
    for l, ((wa, ba), (wc, bc)) in enumerate(zip(actor_params, critic_params)):
        ia, oa = wa.shape
        ic, oc = wc.shape
        if l == 0:
            w = jnp.concatenate([wa, wc], axis=1)
            b = jnp.concatenate([ba, bc], axis=1)
        elif l < n - 1:
            w = jnp.zeros((ia + ic, oa + oc), jnp.float32)
            w = w.at[:ia, :oa].set(wa)
            w = w.at[ia:, oa:].set(wc)
            b = jnp.concatenate([ba, bc], axis=1)
        else:
            assert oa + oc <= out_w
            w = jnp.zeros((ia + ic, out_w), jnp.float32)
            w = w.at[:ia, :oa].set(wa)
            w = w.at[ia:, oa:oa + oc].set(wc)
            b = jnp.zeros((1, out_w), jnp.float32)
            b = b.at[:, :oa].set(ba)
            b = b.at[:, oa:oa + oc].set(bc)
        if l < n - 1:
            w = w.astype(jnp.bfloat16)
        packed.append((w, b))
    return packed


# -----------------------------------------------------------------------------
# Pure-JAX f32 reference (for a loose numerical sanity check).
# -----------------------------------------------------------------------------
def _reference_forward(actor_params, critic_params, log_std_row, obs, acts):
    def mlp(x, params):
        h = x
        for i, (w, b) in enumerate(params):
            h = h @ w + b
            if i < len(params) - 1:
                h = _selu(h)
        return h
    mean = mlp(obs, actor_params)
    value = mlp(obs, critic_params)
    a_dim = mean.shape[-1]
    diag_l = jnp.exp(2.0 * log_std_row)
    z = (acts - mean) / diag_l
    log_prob = (-0.5 * jnp.sum(z * z, axis=-1)
                - jnp.sum(2.0 * log_std_row) - 0.5 * a_dim * LOG_2PI)
    return log_prob, value, mean


if __name__ == "__main__":
    import numpy as np

    obs_dim = 16
    act_dim = 4
    pi_hid_sizes = [32, 32]
    vf_hid_sizes = [32, 32]
    initial_std = 0.5
    batch = 8

    key = jax.random.PRNGKey(0)

    # actor: obs -> 32 -> 32 -> act, gains [sqrt(2), sqrt(2), 0.01]
    actor_dims = [obs_dim] + pi_hid_sizes + [act_dim]
    actor_gains = [math.sqrt(2.0)] * len(pi_hid_sizes) + [0.01]
    actor_params, key = build_mlp_params(key, actor_dims, actor_gains)

    # critic: obs -> 32 -> 32 -> 1, gains [sqrt(2), sqrt(2), 1.0]
    critic_dims = [obs_dim] + vf_hid_sizes + [1]
    critic_gains = [math.sqrt(2.0)] * len(vf_hid_sizes) + [1.0]
    critic_params, key = build_mlp_params(key, critic_dims, critic_gains)

    packed_params = pack_actor_critic_params(actor_params, critic_params)

    # log_std parameter: log(initial_std) * ones(act_dim), kept as (1, A)
    log_std_row = jnp.full((1, act_dim), math.log(initial_std), dtype=jnp.float32)

    key, k_obs, k_act = jax.random.split(key, 3)
    observations = jax.random.normal(k_obs, (batch, obs_dim), dtype=jnp.float32)
    states = jnp.zeros((batch, obs_dim), dtype=jnp.float32)  # unused in forward
    actions = jax.random.normal(k_act, (batch, act_dim), dtype=jnp.float32)

    outs = actor_critic_forward(packed_params, log_std_row,
                                observations, states, actions)
    outs = jax.block_until_ready(outs)

    actions_log_prob, entropy, value, actions_mean, log_std_rep = outs
    assert actions_log_prob.shape == (batch,)
    assert entropy.shape == (batch,)
    assert value.shape == (batch, 1)
    assert actions_mean.shape == (batch, act_dim)
    assert log_std_rep.shape == (batch, act_dim)

    # Loose check vs. f32 reference (hidden matmuls run bf16 with f32 accum,
    # mean slab is stored bf16; log_prob / value stay f32 end-to-end).
    ref_lp, ref_v, ref_m = _reference_forward(actor_params, critic_params,
                                              log_std_row, observations, actions)
    np.testing.assert_allclose(np.asarray(actions_log_prob), np.asarray(ref_lp),
                               rtol=0.1, atol=0.1)
    np.testing.assert_allclose(np.asarray(value), np.asarray(ref_v),
                               rtol=0.1, atol=0.1)
    np.testing.assert_allclose(np.asarray(actions_mean), np.asarray(ref_m),
                               rtol=0.1, atol=0.05)

    print("KERNEL_OK")
</pallas_src>

<mosaic_0001>
module attributes {stable_mosaic.version = 11 : i64} {
  func.func @_fused_kernel(%arg0: i32, %arg1: memref<8x16xbf16, #tpu.memory_space<vmem>>, %arg2: memref<8x4xf32, #tpu.memory_space<vmem>>, %arg3: memref<1x5xf32, #tpu.memory_space<vmem>>, %arg4: memref<16x64xbf16, #tpu.memory_space<vmem>>, %arg5: memref<1x64xf32, #tpu.memory_space<vmem>>, %arg6: memref<64x64xbf16, #tpu.memory_space<vmem>>, %arg7: memref<1x64xf32, #tpu.memory_space<vmem>>, %arg8: memref<64x128xf32, #tpu.memory_space<vmem>>, %arg9: memref<1x128xf32, #tpu.memory_space<vmem>>, %arg10: memref<8x128xbf16, #tpu.memory_space<vmem>>, %arg11: memref<8x2xf32, #tpu.memory_space<vmem>>) attributes {dimension_semantics = [#tpu.dimension_semantics<parallel>], iteration_bounds = array<i64: 1>, scalar_prefetch = 0 : i64, scratch_operands = 0 : i64, tpu.core_type = #tpu.core_type<tc>, window_params = [{transform_indices = @transform_0, window_bounds = array<i64: 8, 16>}, {transform_indices = @transform_1, window_bounds = array<i64: 8, 4>}, {pipeline_mode = #tpu.pipeline_mode<synchronous>, transform_indices = @transform_2, window_bounds = array<i64: 1, 5>}, {pipeline_mode = #tpu.pipeline_mode<synchronous>, transform_indices = @transform_3, window_bounds = array<i64: 16, 64>}, {pipeline_mode = #tpu.pipeline_mode<synchronous>, transform_indices = @transform_4, window_bounds = array<i64: 1, 64>}, {pipeline_mode = #tpu.pipeline_mode<synchronous>, transform_indices = @transform_5, window_bounds = array<i64: 64, 64>}, {pipeline_mode = #tpu.pipeline_mode<synchronous>, transform_indices = @transform_6, window_bounds = array<i64: 1, 64>}, {pipeline_mode = #tpu.pipeline_mode<synchronous>, transform_indices = @transform_7, window_bounds = array<i64: 64, 128>}, {pipeline_mode = #tpu.pipeline_mode<synchronous>, transform_indices = @transform_8, window_bounds = array<i64: 1, 128>}, {transform_indices = @transform_9, window_bounds = array<i64: 8, 128>}, {transform_indices = @transform_10, window_bounds = array<i64: 8, 2>}]} {
    %c0 = arith.constant 0 : index
    %c0_0 = arith.constant 0 : index
    %0 = vector.load %arg1[%c0, %c0_0] : memref<8x16xbf16, #tpu.memory_space<vmem>>, vector<8x16xbf16>
    %c0_1 = arith.constant 0 : index
    %c0_2 = arith.constant 0 : index
    %1 = vector.load %arg4[%c0_1, %c0_2] : memref<16x64xbf16, #tpu.memory_space<vmem>>, vector<16x64xbf16>
    %c0_3 = arith.constant 0 : index
    %c0_4 = arith.constant 0 : index
    %2 = vector.load %arg5[%c0_3, %c0_4] : memref<1x64xf32, #tpu.memory_space<vmem>>, vector<1x64xf32>
    %cst = arith.constant dense<0.000000e+00> : vector<8x64xf32>
    %3 = tpu.matmul %0, %1, %cst {dimension_numbers = #tpu.dot_dimension_numbers<[1], [0], [0], [1], [0, 0, 1, 1], [], []>} : vector<8x16xbf16>, vector<16x64xbf16>, vector<8x64xf32> -> vector<8x64xf32>
    %4 = vector.broadcast %2 : vector<1x64xf32> to vector<8x64xf32>
    %5 = arith.addf %3, %4 : vector<8x64xf32>
    %cst_5 = arith.constant 0.000000e+00 : f32
    %6 = vector.broadcast %cst_5 : f32 to vector<8x64xf32>
    %7 = arith.cmpf ogt, %5, %6 : vector<8x64xf32>
    %8 = math.exp %5 : vector<8x64xf32>
    %cst_6 = arith.constant 1.000000e+00 : f32
    %9 = vector.broadcast %cst_6 : f32 to vector<8x64xf32>
    %10 = arith.subf %8, %9 : vector<8x64xf32>
    %cst_7 = arith.constant 1.67326319 : f32
    %11 = vector.broadcast %cst_7 : f32 to vector<8x64xf32>
    %12 = arith.mulf %11, %10 : vector<8x64xf32>
    %13 = arith.select %7, %5, %12 : vector<8x64xi1>, vector<8x64xf32>
    %cst_8 = arith.constant 1.05070102 : f32
    %14 = vector.broadcast %cst_8 : f32 to vector<8x64xf32>
    %15 = arith.mulf %14, %13 : vector<8x64xf32>
    %c0_9 = arith.constant 0 : index
    %c0_10 = arith.constant 0 : index
    %16 = vector.load %arg6[%c0_9, %c0_10] : memref<64x64xbf16, #tpu.memory_space<vmem>>, vector<64x64xbf16>
    %c0_11 = arith.constant 0 : index
    %c0_12 = arith.constant 0 : index
    %17 = vector.load %arg7[%c0_11, %c0_12] : memref<1x64xf32, #tpu.memory_space<vmem>>, vector<1x64xf32>
    %18 = arith.truncf %15 : vector<8x64xf32> to vector<8x64xbf16>
    %cst_13 = arith.constant dense<0.000000e+00> : vector<8x64xf32>
    %19 = tpu.matmul %18, %16, %cst_13 {dimension_numbers = #tpu.dot_dimension_numbers<[1], [0], [0], [1], [0, 0, 1, 1], [], []>} : vector<8x64xbf16>, vector<64x64xbf16>, vector<8x64xf32> -> vector<8x64xf32>
    %20 = vector.broadcast %17 : vector<1x64xf32> to vector<8x64xf32>
    %21 = arith.addf %19, %20 : vector<8x64xf32>
    %cst_14 = arith.constant 0.000000e+00 : f32
    %22 = vector.broadcast %cst_14 : f32 to vector<8x64xf32>
    %23 = arith.cmpf ogt, %21, %22 : vector<8x64xf32>
    %24 = math.exp %21 : vector<8x64xf32>
    %cst_15 = arith.constant 1.000000e+00 : f32
    %25 = vector.broadcast %cst_15 : f32 to vector<8x64xf32>
    %26 = arith.subf %24, %25 : vector<8x64xf32>
    %cst_16 = arith.constant 1.67326319 : f32
    %27 = vector.broadcast %cst_16 : f32 to vector<8x64xf32>
    %28 = arith.mulf %27, %26 : vector<8x64xf32>
    %29 = arith.select %23, %21, %28 : vector<8x64xi1>, vector<8x64xf32>
    %cst_17 = arith.constant 1.05070102 : f32
    %30 = vector.broadcast %cst_17 : f32 to vector<8x64xf32>
    %31 = arith.mulf %30, %29 : vector<8x64xf32>
    %c0_18 = arith.constant 0 : index
    %c0_19 = arith.constant 0 : index
    %32 = vector.load %arg8[%c0_18, %c0_19] : memref<64x128xf32, #tpu.memory_space<vmem>>, vector<64x128xf32>
    %c0_20 = arith.constant 0 : index
    %c0_21 = arith.constant 0 : index
    %33 = vector.load %arg9[%c0_20, %c0_21] : memref<1x128xf32, #tpu.memory_space<vmem>>, vector<1x128xf32>
    %cst_22 = arith.constant dense<0.000000e+00> : vector<8x128xf32>
    %34 = tpu.matmul %31, %32, %cst_22 {dimension_numbers = #tpu.dot_dimension_numbers<[1], [0], [0], [1], [0, 0, 1, 1], [], []>} : vector<8x64xf32>, vector<64x128xf32>, vector<8x128xf32> -> vector<8x128xf32>
    %35 = vector.broadcast %33 : vector<1x128xf32> to vector<8x128xf32>
    %36 = arith.addf %34, %35 : vector<8x128xf32>
    %37 = vector.extract_strided_slice %36 {offsets = [0, 0], sizes = [8, 4], strides = [1, 1]} : vector<8x128xf32> to vector<8x4xf32>
    %38 = vector.extract_strided_slice %36 {offsets = [0, 4], sizes = [8, 1], strides = [1, 1]} : vector<8x128xf32> to vector<8x1xf32>
    %c0_23 = arith.constant 0 : index
    %c0_24 = arith.constant 0 : index
    %39 = vector.load %arg3[%c0_23, %c0_24] : memref<1x5xf32, #tpu.memory_space<vmem>>, vector<1x4xf32>
    %c0_25 = arith.constant 0 : index
    %c4 = arith.constant 4 : index
    %40 = vector.load %arg3[%c0_25, %c4] : memref<1x5xf32, #tpu.memory_space<vmem>>, vector<1x1xf32>
    %c0_26 = arith.constant 0 : index
    %c0_27 = arith.constant 0 : index
    %41 = vector.load %arg2[%c0_26, %c0_27] : memref<8x4xf32, #tpu.memory_space<vmem>>, vector<8x4xf32>
    %42 = arith.subf %41, %37 : vector<8x4xf32>
    %43 = vector.broadcast %39 : vector<1x4xf32> to vector<8x4xf32>
    %44 = arith.mulf %42, %43 : vector<8x4xf32>
    %45 = arith.mulf %44, %44 : vector<8x4xf32>
    %cst_28 = arith.constant dense<0.000000e+00> : vector<8xf32>
    %46 = vector.multi_reduction <add>, %45, %cst_28 [1] : vector<8x4xf32> to vector<8xf32>
    %47 = vector.shape_cast %46 : vector<8xf32> to vector<8x1xf32>
    %cst_29 = arith.constant -5.000000e-01 : f32
    %48 = vector.broadcast %cst_29 : f32 to vector<8x1xf32>
    %49 = arith.mulf %48, %47 : vector<8x1xf32>
    %50 = vector.broadcast %40 : vector<1x1xf32> to vector<8x1xf32>
    %51 = arith.addf %49, %50 : vector<8x1xf32>
    %52 = arith.truncf %36 : vector<8x128xf32> to vector<8x128xbf16>
    %c0_30 = arith.constant 0 : index
    %c0_31 = arith.constant 0 : index
    %53 = vector.load %arg10[%c0_30, %c0_31] : memref<8x128xbf16, #tpu.memory_space<vmem>>, vector<8x128xbf16>
    tpu.vector_store %arg10[%c0_30, %c0_31], %52 {strides = array<i32>} : memref<8x128xbf16, #tpu.memory_space<vmem>>, vector<8x128xbf16>,
    %54 = tpu.concatenate %51, %38 in 1 : vector<8x1xf32>, vector<8x1xf32> -> vector<8x2xf32>
    %c0_32 = arith.constant 0 : index
    %c0_33 = arith.constant 0 : index
    %55 = vector.load %arg11[%c0_32, %c0_33] : memref<8x2xf32, #tpu.memory_space<vmem>>, vector<8x2xf32>
    tpu.vector_store %arg11[%c0_32, %c0_33], %54 {strides = array<i32>} : memref<8x2xf32, #tpu.memory_space<vmem>>, vector<8x2xf32>,
    return
  }
  func.func @transform_0(%arg0: i32) -> (i32, i32) {
    %c0_i32 = arith.constant 0 : i32
    %c0_i32_0 = arith.constant 0 : i32
    return %arg0, %c0_i32 : i32, i32
  }
  func.func @transform_1(%arg0: i32) -> (i32, i32) {
    %c0_i32 = arith.constant 0 : i32
    %c0_i32_0 = arith.constant 0 : i32
    return %arg0, %c0_i32 : i32, i32
  }
  func.func @transform_2(%arg0: i32) -> (i32, i32) {
    %c0_i32 = arith.constant 0 : i32
    %c0_i32_0 = arith.constant 0 : i32
    %c0_i32_1 = arith.constant 0 : i32
    return %c0_i32, %c0_i32_0 : i32, i32
  }
  func.func @transform_3(%arg0: i32) -> (i32, i32) {
    %c0_i32 = arith.constant 0 : i32
    %c0_i32_0 = arith.constant 0 : i32
    %c0_i32_1 = arith.constant 0 : i32
    return %c0_i32, %c0_i32_0 : i32, i32
  }
  func.func @transform_4(%arg0: i32) -> (i32, i32) {
    %c0_i32 = arith.constant 0 : i32
    %c0_i32_0 = arith.constant 0 : i32
    %c0_i32_1 = arith.constant 0 : i32
    return %c0_i32, %c0_i32_0 : i32, i32
  }
  func.func @transform_5(%arg0: i32) -> (i32, i32) {
    %c0_i32 = arith.constant 0 : i32
    %c0_i32_0 = arith.constant 0 : i32
    %c0_i32_1 = arith.constant 0 : i32
    return %c0_i32, %c0_i32_0 : i32, i32
  }
  func.func @transform_6(%arg0: i32) -> (i32, i32) {
    %c0_i32 = arith.constant 0 : i32
    %c0_i32_0 = arith.constant 0 : i32
    %c0_i32_1 = arith.constant 0 : i32
    return %c0_i32, %c0_i32_0 : i32, i32
  }
  func.func @transform_7(%arg0: i32) -> (i32, i32) {
    %c0_i32 = arith.constant 0 : i32
    %c0_i32_0 = arith.constant 0 : i32
    %c0_i32_1 = arith.constant 0 : i32
    return %c0_i32, %c0_i32_0 : i32, i32
  }
  func.func @transform_8(%arg0: i32) -> (i32, i32) {
    %c0_i32 = arith.constant 0 : i32
    %c0_i32_0 = arith.constant 0 : i32
    %c0_i32_1 = arith.constant 0 : i32
    return %c0_i32, %c0_i32_0 : i32, i32
  }
  func.func @transform_9(%arg0: i32) -> (i32, i32) {
    %c0_i32 = arith.constant 0 : i32
    %c0_i32_0 = arith.constant 0 : i32
    return %arg0, %c0_i32 : i32, i32
  }
  func.func @transform_10(%arg0: i32) -> (i32, i32) {
    %c0_i32 = arith.constant 0 : i32
    %c0_i32_0 = arith.constant 0 : i32
    return %arg0, %c0_i32 : i32, i32
  }
}

</mosaic_0001>

<bundles_post_ra>
// kernel: tpu_custom_call.1
= control target key start
LH: loop header
LB: loop body
LE: loop exit
PB: predicated region body
PF: predicated region fallthrough
CT: control target
= control target key end

     0   :  { %16 = vsyncpa [#allocation3], 0  ;;  %s662_s0 = inlined_call_operand.vmem [shape: bf16[8,16], index: 0, kind: input, shape index: {}]   ;;  %s663_s1 = inlined_call_operand.vmem [shape: f32[8,4], index: 1, kind: input, shape index: {}]   ;;  %s664_s2 = inlined_call_operand.vmem [shape: f32[1,5], index: 2, kind: input, shape index: {}]   ;;  %s665_s3 = inlined_call_operand.vmem [shape: bf16[16,64], index: 3, kind: input, shape index: {}]   ;;  %s666_s4 = inlined_call_operand.vmem [shape: f32[1,64], index: 4, kind: input, shape index: {}]   ;;  %s667_s5 = inlined_call_operand.hbm [shape: bf16[64,64], index: 5, kind: input, shape index: {}]   ;;  %s668_s6 = inlined_call_operand.vmem [shape: f32[1,64], index: 6, kind: input, shape index: {}]   ;;  %s669_s7 = inlined_call_operand.hbm [shape: f32[64,128], index: 7, kind: input, shape index: {}]   ;;  %s670_s8 = inlined_call_operand.vmem [shape: f32[1,128], index: 8, kind: input, shape index: {}]   ;;  %s671_s9 = inlined_call_operand.hbm [shape: bf16[8,128], index: 9, kind: output, shape index: {0}]   ;;  %s672_s10 = inlined_call_operand.vmem [shape: f32[8,2], index: 10, kind: output, shape index: {1}]  }
   0x1   :  { %17 = vsyncpa [#allocation6], 0 }
   0x2   :  { %18 = vsyncpa [#allocation4], 0  ;;  %s533_s13 = smov [#allocation2]   ;;  %s461_s17 = scalar_lea.hbm %s667_s5, 512 }
   0x3   :  { %s34_s14 = sshll.u32 %s533_s13, 4  ;;  %p462_p0 = scmp.ne.s32.totalorder %s667_s5, %s461_s17  ;;  %s35_s14 = int_to_ptr.vmem [resolvable:$true] %s34_s14 }
   0x4   :  { %p465_p1 = scmp.lt.u32.totalorder %s461_s17, %s667_s5 }
   0x6   :  { %p467_p2 = pnand %p465_p1, %p462_p0 }
   0x8   :  { %470 = shalt.err (!%p467_p2)
}
   0x9   :  { %s471_s22 = scalar_lea.vmem %s35_s14, 512  ;;  %p476_p4 = scmp.lt.s32.totalorder %s35_s14, %s35_s14 }
   0xa   :  { %p472_p3 = scmp.ne.s32.totalorder %s35_s14, %s471_s22  ;;  %p477_p5 = scmp.lt.s32.totalorder %s471_s22, %s471_s22 }
   0xc   :  { %p478_p6 = por %p477_p5, %p476_p4 }
   0xe   :  { %p479_p7 = pnand %p478_p6, %p472_p3 }
  0x10   :  { %482 = shalt.err (!%p479_p7)
}
  0x11   :  { %s534_s23 = smov 64   ;;  %s535_s24 = smov 4  }
  0x12   :  { %40 = dma.hbm_to_vmem [thread:$0]  %s667_s5, 512, %s35_s14, [#allocation3], %s534_s23, %s534_s23, %s535_s24  }
  0x13   :  { %s536_s27 = smov [#allocation5]   ;;  %s483_s11 = scalar_lea.hbm %s669_s7, 1024 }
  0x14   :  { %s48_s28 = sshll.u32 %s536_s27, 4  ;;  %p484_p8 = scmp.ne.s32.totalorder %s669_s7, %s483_s11  ;;  %s49_s28 = int_to_ptr.vmem [resolvable:$true] %s48_s28 }
  0x15   :  { %p487_p9 = scmp.lt.u32.totalorder %s483_s11, %s669_s7 }
  0x17   :  { %p489_p10 = pnand %p487_p9, %p484_p8 }
  0x19   :  { %492 = shalt.err (!%p489_p10)
}
  0x1a   :  { %s493_s17 = scalar_lea.vmem %s49_s28, 1024  ;;  %p498_p12 = scmp.lt.s32.totalorder %s49_s28, %s49_s28 }
  0x1b   :  { %p494_p11 = scmp.ne.s32.totalorder %s49_s28, %s493_s17  ;;  %p499_p13 = scmp.lt.s32.totalorder %s493_s17, %s493_s17 }
  0x1d   :  { %p500_p0 = por %p499_p13, %p498_p12 }
  0x1f   :  { %p501_p1 = pnand %p500_p0, %p494_p11 }
  0x21   :  { %504 = shalt.err (!%p501_p1)
}
  0x22   :  { %s537_s5 = smov 128   ;;  %s538_s14 = smov 8  }
  0x23   :  { %54 = dma.hbm_to_vmem [thread:$0]  %s669_s7, 1024, %s49_s28, [#allocation6], %s537_s5, %s537_s5, %s538_s14  }
  0x24   :  { %527 = dma.done.wait [#allocation3], 512  }
  0x25   :  { %528 = vsyncadd [#allocation3], 4294966784 }
  0x26   :  { %529 = dma.done.wait [#allocation6], 1024  }
  0x27   :  { %530 = vsyncadd [#allocation6], 4294966272  ;;  %v539_v0 = vmov 0.0   ;;  %vm540_vm0 = vmmov 0   ;;  %v452_v1 = vld [vmem:[%s665_s3] sm:$0xff]   ;;  %vm80_vm1 = vcmask 130048  }
  0x28   :  { %391 = vmatprep.subr.bf16.mxu0 %v539_v0  ;;  %393 = vmatprep.mubr.msk.bf16.mxu0 %vm540_vm0, %v539_v0  ;;  %v64_v2 = vld [vmem:[%s662_s0] sm:$0xf]  ;;  %v454_v4 = vld [vmem:[#allocation2 + $0x8] sm:$0xff]   ;;  %v455_v5 = vld [vmem:[#allocation2 + $0x10] sm:$0xff]   ;;  %vm171_vm3 = vcmask 523264   ;;  %v541_v23 = vmov 0.0|0.0  }
  0x29   :  { %397 = vmatprep.subr.bf16.mxu1 %v539_v0  ;;  %405 = vmatprep.mubr.msk.bf16.mxu1 %vm540_vm0, %v539_v0  ;;  %v453_v3 = vld [vmem:[#allocation2] sm:$0xff]   ;;  %v456_v6 = vld [vmem:[#allocation2 + $0x18] sm:$0xff]   ;;  %v223_v21 = vld [vmem:[#allocation5 + $0x8] sm:$0xff]  ;;  %s542_s29 = smov 125   ;;  %vm321_vm5 = vcmask 31744  }
  0x2a   :  { %392 = vmatpush3.bf16.msra.mxu0 %v452_v1  ;;  %398 = vmatpush3.bf16.msra.mxu1 %v453_v3  ;;  %v361_v7 = vld [vmem:[%s666_s4] ss:$0 sm:$0xff]  ;;  %v224_v24 = vld [vmem:[#allocation5 + $0x10] sm:$0xff]  ;;  %v225_v25 = vld [vmem:[#allocation5 + $0x18] sm:$0xff] }
  0x2b   :  { %399 = vmatprep.subr.bf16.mxu1 %v539_v0  ;;  %v222_v20 = vld [vmem:[#allocation5] sm:$0xff]  ;;  %428 = vmatprep.subr.bf16.mxu0 %v541_v23  ;;  %v432_v26 = vpack.c.bf16 %v225_v25, %v224_v24  ;;  %v227_v28 = vld [vmem:[#allocation5 + $0x28] sm:$0xff]  ;;  %v228_v30 = vld [vmem:[#allocation5 + $0x30] sm:$0xff] }
  0x2c   :  { %v429_v22 = vpack.c.bf16 %v223_v21, %v222_v20  ;;  %v226_v27 = vld [vmem:[#allocation5 + $0x20] sm:$0xff]  ;;  %v229_v31 = vld [vmem:[#allocation5 + $0x38] sm:$0xff] }
  0x2d   :  { %394 = vmatmul.mubr.msk.bf16.vlgmr.msra.gmra.mrb[0].mxu0 %vm80_vm1, %v64_v2  ;;  %v435_v29 = vpack.c.bf16 %v227_v28, %v226_v27  ;;  %v438_v32 = vpack.c.bf16 %v229_v31, %v228_v30  ;;  %v365_v33 = vld [vmem:[%s668_s6] ss:$0 sm:$0xff] }
  0x2e   :  { %425 = vmatprep.mubr.msk.f32.mxu0 %vm540_vm0, %v539_v0  ;;  %400 = vmatpush3.bf16.msra.mxu1 %v454_v4  ;;  %v372_v45 = vld [vmem:[%s670_s8] ss:$0 sm:$0xff]  ;;  %s543_s8 = smov [#allocation7]  }
  0x2f   :  { %401 = vmatprep.subr.bf16.mxu1 %v539_v0  ;;  %430 = vmatpush3.bf16.msra.mxu0 %v429_v22  ;;  %v311_v47 = vld [vmem:[%s663_s1] sm:$0xff]  ;;  %s347_s30 = sshll.u32 %s543_s8, 4  ;;  %s348_s30 = int_to_ptr.vmem [resolvable:$true] %s347_s30 }
  0x30   :  { %431 = vmatprep.subr.bf16.mxu0 %v541_v23  ;;  %v374_v50 = vld [vmem:[%s664_s2] ss:$0 sm:$0xff]  ;;  %s505_s1 = scalar_lea.vmem %s348_s30, 64  ;;  %p510_p3 = scmp.lt.s32.totalorder %s348_s30, %s348_s30 }
  0x31   :  { %p506_p2 = scmp.ne.s32.totalorder %s348_s30, %s505_s1  ;;  %p511_p4 = scmp.lt.s32.totalorder %s505_s1, %s505_s1 }
  0x32   :  { %402 = vmatpush3.bf16.msra.mxu1 %v455_v5 }
  0x33   :  { %403 = vmatprep.subr.bf16.mxu1 %v539_v0  ;;  %433 = vmatpush3.bf16.msra.mxu0 %v432_v26  ;;  %p512_p5 = por %p511_p4, %p510_p3 }
  0x34   :  { %434 = vmatprep.subr.bf16.mxu0 %v541_v23 }
  0x35   :  { %p513_p6 = pnand %p512_p5, %p506_p2 }
  0x36   :  { %404 = vmatpush3.bf16.msra.mxu1 %v456_v6 }
  0x37   :  { %436 = vmatpush3.bf16.msra.mxu0 %v435_v29 }
  0x38   :  { %437 = vmatprep.subr.bf16.mxu0 %v541_v23 }
  0x3b   :  { %439 = vmatpush3.bf16.msra.mxu0 %v438_v32 }
 0x100   :  { %v118_v8 = vpop.f32.mrb[0].mxu0 }
 0x101   :  { %v119_v9 = vadd.f32 %v361_v7, %v118_v8  ;;  %v395_v10 = vpop.f32.mrb[1].mxu0 }
 0x102   :  { %v121_v11 = vpop.f32.mrb[2].mxu0 }
 0x103   :  { %v125_v12 = vmul.f32 1.442695, %v119_v9  ;;  %v396_v13 = vpop.f32.mrb[3].mxu0  ;;  %vm124_vm2 = vcmp.gt.f32.partialorder %v119_v9, 0.0 }
 0x105   :  { %457 = vpow2.f32 %v125_v12 }
 0x10f   :  { %v458_v14 = vpop.eup %457 }
 0x110   :  { %v364_v15 = vadd.f32 -1.0, %v458_v14 }
 0x112   :  { %v128_v16 = vmul.f32 1.6732632, %v364_v15 }
 0x114   :  { %v129_v17 = vsel %vm124_vm2, %v119_v9, %v128_v16 }
 0x115   :  { %v130_v18 = vmul.f32 1.050701, %v129_v17 }
 0x117   :  { %v140_v19 = vpack.c.bf16 %v130_v18, %v130_v18 }
 0x119   :  { %406 = vmatmul.mubr.msk.bf16.vlgmr.msra.gmra.mrb[0].mxu1 %vm171_vm3, %v140_v19 }
 0x1ec   :  { %v209_v34 = vpop.f32.mrb[0].mxu1 }
 0x1ed   :  { %v210_v35 = vadd.f32 %v365_v33, %v209_v34  ;;  %v407_v36 = vpop.f32.mrb[1].mxu1 }
 0x1ee   :  { %v212_v37 = vpop.f32.mrb[2].mxu1 }
 0x1ef   :  { %v216_v38 = vmul.f32 1.442695, %v210_v35  ;;  %v408_v39 = vpop.f32.mrb[3].mxu1  ;;  %vm215_vm4 = vcmp.gt.f32.partialorder %v210_v35, 0.0 }
 0x1f1   :  { %459 = vpow2.f32 %v216_v38 }
 0x1fb   :  { %v460_v40 = vpop.eup %459 }
 0x1fc   :  { %v371_v41 = vadd.f32 -1.0, %v460_v40 }
 0x1fe   :  { %v219_v42 = vmul.f32 1.6732632, %v371_v41 }
 0x200   :  { %v220_v43 = vsel %vm215_vm4, %v210_v35, %v219_v42 }
 0x201   :  { %v221_v44 = vmul.f32 1.050701, %v220_v43 }
 0x203   :  { %426 = vmatmul.mubr.msk.f32.vlgmr.msra.gmra.mrb[4].mxu0 %vm171_vm3, %v221_v44 }
 0x2d6   :  { %v306_v46 = vpop.f32.mrb[4].mxu0 }
 0x2d7   :  { %v307_v48 = vadd.f32 %v372_v45, %v306_v46  ;;  %v427_v49 = vpop.f32.mrb[5].mxu0 }
 0x2d9   :  { %334 = vrot.lane.b32.xlu1 %v307_v48, %s542_s29  ;;  %v312_v51 = vsub.f32 %v311_v47, %v307_v48  ;;  %v327_v52 = vpack.c.bf16 %v307_v48, %v307_v48 }
 0x2db   :  { %v319_v53 = vmul.f32 %v374_v50, %v312_v51  ;;  %328 = vst [vmem:[#allocation7] sm:$0xf] %v327_v52 }
 0x2dd   :  { %v320_v54 = vmul.f32 %v319_v53, %v319_v53 }
 0x2df   :  { %v322_v55 = vsel %vm321_vm5, %v320_v54, 0.0 }
 0x2e0   :  { %323 = vadd.xlane.f32.xlu0 %v322_v55 }
 0x2e1   :  { %516 = shalt.err (!%p513_p6)
}
 0x2e2   :  { %s517_s12 = scalar_lea.hbm %s671_s9, 64 }
 0x2e3   :  { %p518_p7 = scmp.ne.s32.totalorder %s671_s9, %s517_s12  ;;  %p521_p8 = scmp.lt.u32.totalorder %s517_s12, %s671_s9 }
 0x2e5   :  { %p523_p9 = pnand %p521_p8, %p518_p7 }
 0x2e7   :  { %526 = shalt.err (!%p523_p9)
}
 0x2e8   :  { %350 = dma.vmem_to_hbm [thread:$0]  %s348_s30, 64, %s671_s9, [#allocation4]   ;;  %vm337_vm6 = vcmask 7168   ;;  %vm339_vm7 = vcmask 15360  }
 0x2e9   :  { %s544_s18 = smov 124  }
 0x34b   :  { %v335_v59 = vpop.permute.xlu1 %334 }
 0x36d   :  { %v324_v56 = vpop.xlane.xlu0 %323 }
 0x36e   :  { %v325_v57 = vmul.f32 -0.5, %v324_v56 }
 0x370   :  { %v326_v58 = vadd.f32 %v374_v50, %v325_v57 }
 0x372   :  { %330 = vrot.lane.b32.xlu0 %v326_v58, %s544_s18 }
 0x3e4   :  { %v331_v60 = vpop.permute.xlu0 %330 }
 0x3e5   :  { %v338_v61 = vsel %vm337_vm6, %v331_v60, %v335_v59 }
 0x3e6   :  { %340 = vst.msk [vmem:[%s672_s10] sm:$0xff] %vm339_vm7, %v338_v61 }
 0x3e7   :  { %531 = dma.done.wait [#allocation4], 64  }
 0x3e8   :  { %532 = vsyncadd [#allocation4], 4294967232 }
 0x3e9   :  { %358 = vsyncpa [#allocation3], 1 }
 0x3ea   :  { %359 = vsyncpa [#allocation6], 1 }
 0x3eb   :  { %360 = vsyncpa [#allocation4], 1 }

</bundles_post_ra>
